<compile_context>
chip_gen: v5e
topology: v5e:2x2
jax: 0.10.0
libtpu: 0.0.40
codegen_flags: <defaults>
</compile_context>

<pallas_src>
import functools

import jax
import jax.numpy as jnp
from jax import lax
from jax.experimental import pallas as pl
from jax.experimental.pallas import tpu as pltpu


def _round_up(x, m):
    return (x + m - 1) // m * m


def _l2_normalize(x):
    # F.normalize(x, dim=1): x / max(||x||_2, 1e-12)
    x = x.astype(jnp.float32)
    norm = jnp.sqrt(jnp.sum(x * x, axis=1, keepdims=True))
    return x * (1.0 / jnp.maximum(norm, 1e-12))


def _ntxent_kernel(xi_q_ref, xj_q_ref, xi_k_ref, xj_k_ref,            # inputs
                   loss_i_ref, loss_j_ref,                            # outputs
                   ziq_ref, zjq_ref, pos_ref, acc_i_ref, acc_j_ref,   # scratch
                   *, b, tb, inv_t, mxu_dtype, out_lanes):
    qi = pl.program_id(0)
    ki = pl.program_id(1)
    nk = pl.num_programs(1)

    # --- per row-tile setup: normalize the two anchor views once, cache as MXU dtype,
    #     compute the single positive cosine per row, zero the exp-sum accumulators. ---
    @pl.when(ki == 0)
    def _init():
        ziq = _l2_normalize(xi_q_ref[...])
        zjq = _l2_normalize(xj_q_ref[...])
        pos_ref[...] = jnp.sum(ziq * zjq, axis=1, keepdims=True)  # cos of the positive pair
        ziq_ref[...] = ziq.astype(mxu_dtype)
        zjq_ref[...] = zjq.astype(mxu_dtype)
        acc_i_ref[...] = jnp.zeros_like(acc_i_ref)
        acc_j_ref[...] = jnp.zeros_like(acc_j_ref)

    # --- key tile: normalize and feed the MXU (NT contraction, f32 accumulation). ---
    zik = _l2_normalize(xi_k_ref[...]).astype(mxu_dtype)
    zjk = _l2_normalize(xj_k_ref[...]).astype(mxu_dtype)
    ziq = ziq_ref[...]
    zjq = zjq_ref[...]
    dn = (((1,), (1,)), ((), ()))  # contract feature dim of both operands (no transpose op)
    s_ii = lax.dot_general(ziq, zik, dn, preferred_element_type=jnp.float32)
    s_ij = lax.dot_general(ziq, zjk, dn, preferred_element_type=jnp.float32)
    s_ji = lax.dot_general(zjq, zik, dn, preferred_element_type=jnp.float32)
    s_jj = lax.dot_general(zjq, zjk, dn, preferred_element_type=jnp.float32)

    # exp(logits - rowmax); rowmax = 1/T analytically, so the shift is (cos - 1)/T.
    e_ii = jnp.exp((s_ii - 1.0) * inv_t)
    e_ij = jnp.exp((s_ij - 1.0) * inv_t)
    e_ji = jnp.exp((s_ji - 1.0) * inv_t)
    e_jj = jnp.exp((s_jj - 1.0) * inv_t)

    # Self-column exclusion: only the diagonal of s_ii / s_jj on the ki == qi tile.
    r = lax.broadcasted_iota(jnp.int32, (tb, tb), 0)
    c = lax.broadcasted_iota(jnp.int32, (tb, tb), 1)
    not_self = (r - c) != (ki - qi) * tb  # all-True whenever ki != qi
    if b % tb != 0:
        # Drop zero-padded key rows (they only exist in the last key tile).
        col_ok = (ki * tb + c) < b
        keep_diag = jnp.logical_and(not_self, col_ok)
        sum_i = (jnp.sum(jnp.where(keep_diag, e_ii, 0.0), axis=1, keepdims=True)
                 + jnp.sum(jnp.where(col_ok, e_ij, 0.0), axis=1, keepdims=True))
        sum_j = (jnp.sum(jnp.where(col_ok, e_ji, 0.0), axis=1, keepdims=True)
                 + jnp.sum(jnp.where(keep_diag, e_jj, 0.0), axis=1, keepdims=True))
    else:
        sum_i = (jnp.sum(jnp.where(not_self, e_ii, 0.0), axis=1, keepdims=True)
                 + jnp.sum(e_ij, axis=1, keepdims=True))
        sum_j = (jnp.sum(e_ji, axis=1, keepdims=True)
                 + jnp.sum(jnp.where(not_self, e_jj, 0.0), axis=1, keepdims=True))

    acc_i_ref[...] += sum_i
    acc_j_ref[...] += sum_j

    # --- finalize this row tile: per-row loss = log(sum exp) - positive logit. ---
    @pl.when(ki == nk - 1)
    def _fin():
        pos_logit = (pos_ref[...] - 1.0) * inv_t
        li = jnp.log(acc_i_ref[...]) - pos_logit
        lj = jnp.log(acc_j_ref[...]) - pos_logit
        loss_i_ref[...] = jnp.broadcast_to(li, (tb, out_lanes))
        loss_j_ref[...] = jnp.broadcast_to(lj, (tb, out_lanes))


def contrastive_loss(x_i, x_j, temperature: float = 0.1, *,
                     block_rows: int = 128, mxu_dtype=jnp.bfloat16):
    """Pallas TPU forward of ContrastiveLoss()(x_i, x_j) with projector=Identity, labels=None."""
    # TODO(synk): labels != None (supervised torch.eq(labels, labels.T) mask) not implemented.
    assert x_i.shape == x_j.shape and x_i.ndim == 2
    b, d = x_i.shape
    out_lanes = 128

    # Lane/sublane-aligned shapes: D -> multiple of 128, rows -> multiple of the row tile.
    d_pad = _round_up(max(d, 1), 128)
    tb = min(_round_up(block_rows, 8), _round_up(b, 8))
    b_pad = _round_up(b, tb)
    nq = b_pad // tb
    nk = nq

    if (b_pad, d_pad) != (b, d):
        x_i = jnp.pad(x_i, ((0, b_pad - b), (0, d_pad - d)))
        x_j = jnp.pad(x_j, ((0, b_pad - b), (0, d_pad - d)))

    kernel = functools.partial(
        _ntxent_kernel, b=b, tb=tb, inv_t=float(1.0 / temperature),
        mxu_dtype=mxu_dtype, out_lanes=out_lanes)

    grid_spec = pltpu.PrefetchScalarGridSpec(
        num_scalar_prefetch=0,
        grid=(nq, nk),
        in_specs=[
            pl.BlockSpec((tb, d_pad), lambda qi, ki: (qi, 0)),   # x_i anchor rows
            pl.BlockSpec((tb, d_pad), lambda qi, ki: (qi, 0)),   # x_j anchor rows
            pl.BlockSpec((tb, d_pad), lambda qi, ki: (ki, 0)),   # x_i key rows
            pl.BlockSpec((tb, d_pad), lambda qi, ki: (ki, 0)),   # x_j key rows
        ],
        out_specs=[
            pl.BlockSpec((tb, out_lanes), lambda qi, ki: (qi, 0)),
            pl.BlockSpec((tb, out_lanes), lambda qi, ki: (qi, 0)),
        ],
        scratch_shapes=[
            pltpu.VMEM((tb, d_pad), mxu_dtype),   # cached normalized z_i anchors
            pltpu.VMEM((tb, d_pad), mxu_dtype),   # cached normalized z_j anchors
            pltpu.VMEM((tb, 1), jnp.float32),     # positive-pair cosine per row
            pltpu.VMEM((tb, 1), jnp.float32),     # running sum(exp) for i-anchor rows
            pltpu.VMEM((tb, 1), jnp.float32),     # running sum(exp) for j-anchor rows
        ],
    )

    n = 2 * b
    cost = pl.CostEstimate(
        flops=2 * n * n * d + 8 * n * d,
        transcendentals=n * n + 2 * n,
        bytes_accessed=2 * b_pad * d_pad * x_i.dtype.itemsize
        + 2 * b_pad * out_lanes * 4,
    )

    loss_i, loss_j = pl.pallas_call(
        kernel,
        out_shape=(jax.ShapeDtypeStruct((b_pad, out_lanes), jnp.float32),
                   jax.ShapeDtypeStruct((b_pad, out_lanes), jnp.float32)),
        grid_spec=grid_spec,
        compiler_params=pltpu.CompilerParams(
            dimension_semantics=("parallel", "arbitrary"),
            vmem_limit_bytes=48 * 1024 * 1024,   # fits v7x's 64 MiB physical VMEM
        ),
        cost_estimate=cost,
    )(x_i, x_j, x_i, x_j)

    # Tiny O(B) epilogue: mean of the 2B per-row losses (zero-padded rows dropped).
    return (jnp.sum(loss_i[:b, 0]) + jnp.sum(loss_j[:b, 0])) / (2 * b)


def _reference_loss(x_i, x_j, temperature=0.1):
    """Pure-JAX f32 reference mirroring the PyTorch module, for verification."""
    def normalize(v):
        return v / jnp.maximum(jnp.linalg.norm(v, axis=1, keepdims=True), 1e-12)

    z_i, z_j = normalize(x_i), normalize(x_j)
    b = z_i.shape[0]
    feat = jnp.concatenate([z_i, z_j], axis=0)  # cat(unbind(stack([zi,zj],1),1),0)
    logits = feat @ feat.T / temperature
    logits = logits - jnp.max(logits, axis=1, keepdims=True)
    mask = jnp.tile(jnp.eye(b, dtype=jnp.float32), (2, 2))
    logits_mask = 1.0 - jnp.eye(2 * b, dtype=jnp.float32)
    mask = mask * logits_mask
    exp_logits = jnp.exp(logits) * logits_mask
    log_prob = logits - jnp.log(jnp.sum(exp_logits, axis=1, keepdims=True))
    mean_log_prob_pos = -jnp.sum(mask * log_prob, axis=1) / jnp.sum(mask, axis=1)
    return jnp.mean(mean_log_prob_pos)


if __name__ == "__main__":
    key = jax.random.PRNGKey(0)
    k1, k2 = jax.random.split(key)
    B, D = 8, 32
    x_i = jax.random.normal(k1, (B, D), dtype=jnp.float32)
    x_j = jax.random.normal(k2, (B, D), dtype=jnp.float32)

    loss = contrastive_loss(x_i, x_j, temperature=0.1)
    loss = jax.block_until_ready(loss)

    ref = _reference_loss(x_i, x_j, temperature=0.1)
    # bf16 MXU inputs (f32 accumulation) => slightly loosened tolerance vs f32 reference.
    assert jnp.allclose(loss, ref, rtol=2e-2, atol=2e-2), (loss, ref)

    print("KERNEL_OK")
</pallas_src>

<mosaic_0001>
module attributes {stable_mosaic.version = 11 : i64} {
  func.func @_ntxent_kernel(%arg0: i32, %arg1: i32, %arg2: memref<8x128xf32, #tpu.memory_space<vmem>>, %arg3: memref<8x128xf32, #tpu.memory_space<vmem>>, %arg4: memref<8x128xf32, #tpu.memory_space<vmem>>, %arg5: memref<8x128xf32, #tpu.memory_space<vmem>>, %arg6: memref<8x128xf32, #tpu.memory_space<vmem>>, %arg7: memref<8x128xf32, #tpu.memory_space<vmem>>, %arg8: memref<8x128xbf16, #tpu.memory_space<vmem>>, %arg9: memref<8x128xbf16, #tpu.memory_space<vmem>>, %arg10: memref<8x1xf32, #tpu.memory_space<vmem>>, %arg11: memref<8x1xf32, #tpu.memory_space<vmem>>, %arg12: memref<8x1xf32, #tpu.memory_space<vmem>>) attributes {dimension_semantics = [#tpu.dimension_semantics<parallel>, #tpu.dimension_semantics<arbitrary>], iteration_bounds = array<i64: 1, 1>, scalar_prefetch = 0 : i64, scratch_operands = 5 : i64, tpu.core_type = #tpu.core_type<tc>, window_params = [{transform_indices = @transform_0, window_bounds = array<i64: 8, 128>}, {transform_indices = @transform_1, window_bounds = array<i64: 8, 128>}, {transform_indices = @transform_2, window_bounds = array<i64: 8, 128>}, {transform_indices = @transform_3, window_bounds = array<i64: 8, 128>}, {transform_indices = @transform_4, window_bounds = array<i64: 8, 128>}, {transform_indices = @transform_5, window_bounds = array<i64: 8, 128>}]} {
    %c0_i32 = arith.constant 0 : i32
    %0 = arith.cmpi eq, %arg1, %c0_i32 : i32
    %1 = arith.extui %0 : i1 to i32
    %c0_i32_0 = arith.constant 0 : i32
    %2 = arith.cmpi ne, %1, %c0_i32_0 : i32
    scf.if %2 {
      %c0_41 = arith.constant 0 : index
      %c0_42 = arith.constant 0 : index
      %83 = vector.load %arg2[%c0_41, %c0_42] : memref<8x128xf32, #tpu.memory_space<vmem>>, vector<8x128xf32>
      %84 = arith.mulf %83, %83 : vector<8x128xf32>
      %cst_43 = arith.constant dense<0.000000e+00> : vector<8xf32>
      %85 = vector.multi_reduction <add>, %84, %cst_43 [1] : vector<8x128xf32> to vector<8xf32>
      %86 = vector.shape_cast %85 : vector<8xf32> to vector<8x1xf32>
      %87 = math.sqrt %86 : vector<8x1xf32>
      %cst_44 = arith.constant 9.99999996E-13 : f32
      %88 = vector.broadcast %cst_44 : f32 to vector<8x1xf32>
      %89 = arith.maximumf %87, %88 : vector<8x1xf32>
      %cst_45 = arith.constant 1.000000e+00 : f32
      %90 = vector.broadcast %cst_45 : f32 to vector<8x1xf32>
      %91 = arith.divf %90, %89 : vector<8x1xf32>
      %92 = vector.broadcast %91 : vector<8x1xf32> to vector<8x128xf32>
      %93 = arith.mulf %83, %92 : vector<8x128xf32>
      %c0_46 = arith.constant 0 : index
      %c0_47 = arith.constant 0 : index
      %94 = vector.load %arg3[%c0_46, %c0_47] : memref<8x128xf32, #tpu.memory_space<vmem>>, vector<8x128xf32>
      %95 = arith.mulf %94, %94 : vector<8x128xf32>
      %cst_48 = arith.constant dense<0.000000e+00> : vector<8xf32>
      %96 = vector.multi_reduction <add>, %95, %cst_48 [1] : vector<8x128xf32> to vector<8xf32>
      %97 = vector.shape_cast %96 : vector<8xf32> to vector<8x1xf32>
      %98 = math.sqrt %97 : vector<8x1xf32>
      %cst_49 = arith.constant 9.99999996E-13 : f32
      %99 = vector.broadcast %cst_49 : f32 to vector<8x1xf32>
      %100 = arith.maximumf %98, %99 : vector<8x1xf32>
      %cst_50 = arith.constant 1.000000e+00 : f32
      %101 = vector.broadcast %cst_50 : f32 to vector<8x1xf32>
      %102 = arith.divf %101, %100 : vector<8x1xf32>
      %103 = vector.broadcast %102 : vector<8x1xf32> to vector<8x128xf32>
      %104 = arith.mulf %94, %103 : vector<8x128xf32>
      %105 = arith.mulf %93, %104 : vector<8x128xf32>
      %cst_51 = arith.constant dense<0.000000e+00> : vector<8xf32>
      %106 = vector.multi_reduction <add>, %105, %cst_51 [1] : vector<8x128xf32> to vector<8xf32>
      %107 = vector.shape_cast %106 : vector<8xf32> to vector<8x1xf32>
      %c0_52 = arith.constant 0 : index
      %c0_53 = arith.constant 0 : index
      %108 = vector.load %arg10[%c0_52, %c0_53] : memref<8x1xf32, #tpu.memory_space<vmem>>, vector<8x1xf32>
      tpu.vector_store %arg10[%c0_52, %c0_53], %107 {strides = array<i32>} : memref<8x1xf32, #tpu.memory_space<vmem>>, vector<8x1xf32>,
      %109 = arith.truncf %93 : vector<8x128xf32> to vector<8x128xbf16>
      %c0_54 = arith.constant 0 : index
      %c0_55 = arith.constant 0 : index
      %110 = vector.load %arg8[%c0_54, %c0_55] : memref<8x128xbf16, #tpu.memory_space<vmem>>, vector<8x128xbf16>
      tpu.vector_store %arg8[%c0_54, %c0_55], %109 {strides = array<i32>} : memref<8x128xbf16, #tpu.memory_space<vmem>>, vector<8x128xbf16>,
      %111 = arith.truncf %104 : vector<8x128xf32> to vector<8x128xbf16>
      %c0_56 = arith.constant 0 : index
      %c0_57 = arith.constant 0 : index
      %112 = vector.load %arg9[%c0_56, %c0_57] : memref<8x128xbf16, #tpu.memory_space<vmem>>, vector<8x128xbf16>
      tpu.vector_store %arg9[%c0_56, %c0_57], %111 {strides = array<i32>} : memref<8x128xbf16, #tpu.memory_space<vmem>>, vector<8x128xbf16>,
      %cst_58 = arith.constant 0.000000e+00 : f32
      %113 = vector.broadcast %cst_58 : f32 to vector<8x1xf32>
      %c0_59 = arith.constant 0 : index
      %c0_60 = arith.constant 0 : index
      %114 = vector.load %arg11[%c0_59, %c0_60] : memref<8x1xf32, #tpu.memory_space<vmem>>, vector<8x1xf32>
      tpu.vector_store %arg11[%c0_59, %c0_60], %113 {strides = array<i32>} : memref<8x1xf32, #tpu.memory_space<vmem>>, vector<8x1xf32>,
      %cst_61 = arith.constant 0.000000e+00 : f32
      %115 = vector.broadcast %cst_61 : f32 to vector<8x1xf32>
      %c0_62 = arith.constant 0 : index
      %c0_63 = arith.constant 0 : index
      %116 = vector.load %arg12[%c0_62, %c0_63] : memref<8x1xf32, #tpu.memory_space<vmem>>, vector<8x1xf32>
      tpu.vector_store %arg12[%c0_62, %c0_63], %115 {strides = array<i32>} : memref<8x1xf32, #tpu.memory_space<vmem>>, vector<8x1xf32>,
    } else {
    }
    %c0 = arith.constant 0 : index
    %c0_1 = arith.constant 0 : index
    %3 = vector.load %arg4[%c0, %c0_1] : memref<8x128xf32, #tpu.memory_space<vmem>>, vector<8x128xf32>
    %4 = arith.mulf %3, %3 : vector<8x128xf32>
    %cst = arith.constant dense<0.000000e+00> : vector<8xf32>
    %5 = vector.multi_reduction <add>, %4, %cst [1] : vector<8x128xf32> to vector<8xf32>
    %6 = vector.shape_cast %5 : vector<8xf32> to vector<8x1xf32>
    %7 = math.sqrt %6 : vector<8x1xf32>
    %cst_2 = arith.constant 9.99999996E-13 : f32
    %8 = vector.broadcast %cst_2 : f32 to vector<8x1xf32>
    %9 = arith.maximumf %7, %8 : vector<8x1xf32>
    %cst_3 = arith.constant 1.000000e+00 : f32
    %10 = vector.broadcast %cst_3 : f32 to vector<8x1xf32>
    %11 = arith.divf %10, %9 : vector<8x1xf32>
    %12 = vector.broadcast %11 : vector<8x1xf32> to vector<8x128xf32>
    %13 = arith.mulf %3, %12 : vector<8x128xf32>
    %14 = arith.truncf %13 : vector<8x128xf32> to vector<8x128xbf16>
    %c0_4 = arith.constant 0 : index
    %c0_5 = arith.constant 0 : index
    %15 = vector.load %arg5[%c0_4, %c0_5] : memref<8x128xf32, #tpu.memory_space<vmem>>, vector<8x128xf32>
    %16 = arith.mulf %15, %15 : vector<8x128xf32>
    %cst_6 = arith.constant dense<0.000000e+00> : vector<8xf32>
    %17 = vector.multi_reduction <add>, %16, %cst_6 [1] : vector<8x128xf32> to vector<8xf32>
    %18 = vector.shape_cast %17 : vector<8xf32> to vector<8x1xf32>
    %19 = math.sqrt %18 : vector<8x1xf32>
    %cst_7 = arith.constant 9.99999996E-13 : f32
    %20 = vector.broadcast %cst_7 : f32 to vector<8x1xf32>
    %21 = arith.maximumf %19, %20 : vector<8x1xf32>
    %cst_8 = arith.constant 1.000000e+00 : f32
    %22 = vector.broadcast %cst_8 : f32 to vector<8x1xf32>
    %23 = arith.divf %22, %21 : vector<8x1xf32>
    %24 = vector.broadcast %23 : vector<8x1xf32> to vector<8x128xf32>
    %25 = arith.mulf %15, %24 : vector<8x128xf32>
    %26 = arith.truncf %25 : vector<8x128xf32> to vector<8x128xbf16>
    %c0_9 = arith.constant 0 : index
    %c0_10 = arith.constant 0 : index
    %27 = vector.load %arg8[%c0_9, %c0_10] : memref<8x128xbf16, #tpu.memory_space<vmem>>, vector<8x128xbf16>
    %c0_11 = arith.constant 0 : index
    %c0_12 = arith.constant 0 : index
    %28 = vector.load %arg9[%c0_11, %c0_12] : memref<8x128xbf16, #tpu.memory_space<vmem>>, vector<8x128xbf16>
    %cst_13 = arith.constant dense<0.000000e+00> : vector<8x8xf32>
    %29 = tpu.matmul %27, %14, %cst_13 {dimension_numbers = #tpu.dot_dimension_numbers<[1], [1], [0], [0], [0, 0, 1, 0], [], []>} : vector<8x128xbf16>, vector<8x128xbf16>, vector<8x8xf32> -> vector<8x8xf32>
    %cst_14 = arith.constant dense<0.000000e+00> : vector<8x8xf32>
    %30 = tpu.matmul %27, %26, %cst_14 {dimension_numbers = #tpu.dot_dimension_numbers<[1], [1], [0], [0], [0, 0, 1, 0], [], []>} : vector<8x128xbf16>, vector<8x128xbf16>, vector<8x8xf32> -> vector<8x8xf32>
    %cst_15 = arith.constant dense<0.000000e+00> : vector<8x8xf32>
    %31 = tpu.matmul %28, %14, %cst_15 {dimension_numbers = #tpu.dot_dimension_numbers<[1], [1], [0], [0], [0, 0, 1, 0], [], []>} : vector<8x128xbf16>, vector<8x128xbf16>, vector<8x8xf32> -> vector<8x8xf32>
    %cst_16 = arith.constant dense<0.000000e+00> : vector<8x8xf32>
    %32 = tpu.matmul %28, %26, %cst_16 {dimension_numbers = #tpu.dot_dimension_numbers<[1], [1], [0], [0], [0, 0, 1, 0], [], []>} : vector<8x128xbf16>, vector<8x128xbf16>, vector<8x8xf32> -> vector<8x8xf32>
    %cst_17 = arith.constant 1.000000e+00 : f32
    %33 = vector.broadcast %cst_17 : f32 to vector<8x8xf32>
    %34 = arith.subf %29, %33 : vector<8x8xf32>
    %cst_18 = arith.constant 1.000000e+01 : f32
    %35 = vector.broadcast %cst_18 : f32 to vector<8x8xf32>
    %36 = arith.mulf %34, %35 : vector<8x8xf32>
    %37 = math.exp %36 : vector<8x8xf32>
    %cst_19 = arith.constant 1.000000e+00 : f32
    %38 = vector.broadcast %cst_19 : f32 to vector<8x8xf32>
    %39 = arith.subf %30, %38 : vector<8x8xf32>
    %cst_20 = arith.constant 1.000000e+01 : f32
    %40 = vector.broadcast %cst_20 : f32 to vector<8x8xf32>
    %41 = arith.mulf %39, %40 : vector<8x8xf32>
    %42 = math.exp %41 : vector<8x8xf32>
    %cst_21 = arith.constant 1.000000e+00 : f32
    %43 = vector.broadcast %cst_21 : f32 to vector<8x8xf32>
    %44 = arith.subf %31, %43 : vector<8x8xf32>
    %cst_22 = arith.constant 1.000000e+01 : f32
    %45 = vector.broadcast %cst_22 : f32 to vector<8x8xf32>
    %46 = arith.mulf %44, %45 : vector<8x8xf32>
    %47 = math.exp %46 : vector<8x8xf32>
    %cst_23 = arith.constant 1.000000e+00 : f32
    %48 = vector.broadcast %cst_23 : f32 to vector<8x8xf32>
    %49 = arith.subf %32, %48 : vector<8x8xf32>
    %cst_24 = arith.constant 1.000000e+01 : f32
    %50 = vector.broadcast %cst_24 : f32 to vector<8x8xf32>
    %51 = arith.mulf %49, %50 : vector<8x8xf32>
    %52 = math.exp %51 : vector<8x8xf32>
    %53 = tpu.iota {dimensions = array<i32: 0>} : vector<8x8xi32>
    %54 = tpu.iota {dimensions = array<i32: 1>} : vector<8x8xi32>
    %55 = arith.subi %53, %54 : vector<8x8xi32>
    %56 = arith.subi %arg1, %arg0 : i32
    %c8_i32 = arith.constant 8 : i32
    %57 = arith.muli %56, %c8_i32 : i32
    %58 = vector.broadcast %57 : i32 to vector<8x8xi32>
    %59 = arith.cmpi ne, %55, %58 : vector<8x8xi32>
    %cst_25 = arith.constant 0.000000e+00 : f32
    %60 = vector.broadcast %cst_25 : f32 to vector<8x8xf32>
    %61 = arith.select %59, %37, %60 : vector<8x8xi1>, vector<8x8xf32>
    %cst_26 = arith.constant dense<0.000000e+00> : vector<8xf32>
    %62 = vector.multi_reduction <add>, %61, %cst_26 [1] : vector<8x8xf32> to vector<8xf32>
    %63 = vector.shape_cast %62 : vector<8xf32> to vector<8x1xf32>
    %cst_27 = arith.constant dense<0.000000e+00> : vector<8xf32>
    %64 = vector.multi_reduction <add>, %42, %cst_27 [1] : vector<8x8xf32> to vector<8xf32>
    %65 = vector.shape_cast %64 : vector<8xf32> to vector<8x1xf32>
    %66 = arith.addf %63, %65 : vector<8x1xf32>
    %cst_28 = arith.constant dense<0.000000e+00> : vector<8xf32>
    %67 = vector.multi_reduction <add>, %47, %cst_28 [1] : vector<8x8xf32> to vector<8xf32>
    %68 = vector.shape_cast %67 : vector<8xf32> to vector<8x1xf32>
    %cst_29 = arith.constant 0.000000e+00 : f32
    %69 = vector.broadcast %cst_29 : f32 to vector<8x8xf32>
    %70 = arith.select %59, %52, %69 : vector<8x8xi1>, vector<8x8xf32>
    %cst_30 = arith.constant dense<0.000000e+00> : vector<8xf32>
    %71 = vector.multi_reduction <add>, %70, %cst_30 [1] : vector<8x8xf32> to vector<8xf32>
    %72 = vector.shape_cast %71 : vector<8xf32> to vector<8x1xf32>
    %73 = arith.addf %68, %72 : vector<8x1xf32>
    %c0_31 = arith.constant 0 : index
    %c0_32 = arith.constant 0 : index
    %74 = vector.load %arg11[%c0_31, %c0_32] : memref<8x1xf32, #tpu.memory_space<vmem>>, vector<8x1xf32>
    %75 = arith.addf %74, %66 : vector<8x1xf32>
    %c0_33 = arith.constant 0 : index
    %c0_34 = arith.constant 0 : index
    %76 = vector.load %arg11[%c0_33, %c0_34] : memref<8x1xf32, #tpu.memory_space<vmem>>, vector<8x1xf32>
    tpu.vector_store %arg11[%c0_33, %c0_34], %75 {strides = array<i32>} : memref<8x1xf32, #tpu.memory_space<vmem>>, vector<8x1xf32>,
    %c0_35 = arith.constant 0 : index
    %c0_36 = arith.constant 0 : index
    %77 = vector.load %arg12[%c0_35, %c0_36] : memref<8x1xf32, #tpu.memory_space<vmem>>, vector<8x1xf32>
    %78 = arith.addf %77, %73 : vector<8x1xf32>
    %c0_37 = arith.constant 0 : index
    %c0_38 = arith.constant 0 : index
    %79 = vector.load %arg12[%c0_37, %c0_38] : memref<8x1xf32, #tpu.memory_space<vmem>>, vector<8x1xf32>
    tpu.vector_store %arg12[%c0_37, %c0_38], %78 {strides = array<i32>} : memref<8x1xf32, #tpu.memory_space<vmem>>, vector<8x1xf32>,
    %c0_i32_39 = arith.constant 0 : i32
    %80 = arith.cmpi eq, %arg1, %c0_i32_39 : i32
    %81 = arith.extui %80 : i1 to i32
    %c0_i32_40 = arith.constant 0 : i32
    %82 = arith.cmpi ne, %81, %c0_i32_40 : i32
    scf.if %82 {
      %c0_41 = arith.constant 0 : index
      %c0_42 = arith.constant 0 : index
      %83 = vector.load %arg10[%c0_41, %c0_42] : memref<8x1xf32, #tpu.memory_space<vmem>>, vector<8x1xf32>
      %cst_43 = arith.constant 1.000000e+00 : f32
      %84 = vector.broadcast %cst_43 : f32 to vector<8x1xf32>
      %85 = arith.subf %83, %84 : vector<8x1xf32>
      %cst_44 = arith.constant 1.000000e+01 : f32
      %86 = vector.broadcast %cst_44 : f32 to vector<8x1xf32>
      %87 = arith.mulf %85, %86 : vector<8x1xf32>
      %c0_45 = arith.constant 0 : index
      %c0_46 = arith.constant 0 : index
      %88 = vector.load %arg11[%c0_45, %c0_46] : memref<8x1xf32, #tpu.memory_space<vmem>>, vector<8x1xf32>
      %89 = math.log %88 : vector<8x1xf32>
      %90 = arith.subf %89, %87 : vector<8x1xf32>
      %c0_47 = arith.constant 0 : index
      %c0_48 = arith.constant 0 : index
      %91 = vector.load %arg12[%c0_47, %c0_48] : memref<8x1xf32, #tpu.memory_space<vmem>>, vector<8x1xf32>
      %92 = math.log %91 : vector<8x1xf32>
      %93 = arith.subf %92, %87 : vector<8x1xf32>
      %94 = vector.shape_cast %90 : vector<8x1xf32> to vector<8x1xf32>
      %95 = vector.broadcast %94 : vector<8x1xf32> to vector<8x128xf32>
      %c0_49 = arith.constant 0 : index
      %c0_50 = arith.constant 0 : index
      %96 = vector.load %arg6[%c0_49, %c0_50] : memref<8x128xf32, #tpu.memory_space<vmem>>, vector<8x128xf32>
      tpu.vector_store %arg6[%c0_49, %c0_50], %95 {strides = array<i32>} : memref<8x128xf32, #tpu.memory_space<vmem>>, vector<8x128xf32>,
      %97 = vector.shape_cast %93 : vector<8x1xf32> to vector<8x1xf32>
      %98 = vector.broadcast %97 : vector<8x1xf32> to vector<8x128xf32>
      %c0_51 = arith.constant 0 : index
      %c0_52 = arith.constant 0 : index
      %99 = vector.load %arg7[%c0_51, %c0_52] : memref<8x128xf32, #tpu.memory_space<vmem>>, vector<8x128xf32>
      tpu.vector_store %arg7[%c0_51, %c0_52], %98 {strides = array<i32>} : memref<8x128xf32, #tpu.memory_space<vmem>>, vector<8x128xf32>,
    } else {
    }
    return
  }
  func.func @transform_0(%arg0: i32, %arg1: i32) -> (i32, i32) {
    %c0_i32 = arith.constant 0 : i32
    %c0_i32_0 = arith.constant 0 : i32
    return %arg0, %c0_i32 : i32, i32
  }
  func.func @transform_1(%arg0: i32, %arg1: i32) -> (i32, i32) {
    %c0_i32 = arith.constant 0 : i32
    %c0_i32_0 = arith.constant 0 : i32
    return %arg0, %c0_i32 : i32, i32
  }
  func.func @transform_2(%arg0: i32, %arg1: i32) -> (i32, i32) {
    %c0_i32 = arith.constant 0 : i32
    %c0_i32_0 = arith.constant 0 : i32
    return %arg1, %c0_i32 : i32, i32
  }
  func.func @transform_3(%arg0: i32, %arg1: i32) -> (i32, i32) {
    %c0_i32 = arith.constant 0 : i32
    %c0_i32_0 = arith.constant 0 : i32
    return %arg1, %c0_i32 : i32, i32
  }
  func.func @transform_4(%arg0: i32, %arg1: i32) -> (i32, i32) {
    %c0_i32 = arith.constant 0 : i32
    %c0_i32_0 = arith.constant 0 : i32
    return %arg0, %c0_i32 : i32, i32
  }
  func.func @transform_5(%arg0: i32, %arg1: i32) -> (i32, i32) {
    %c0_i32 = arith.constant 0 : i32
    %c0_i32_0 = arith.constant 0 : i32
    return %arg0, %c0_i32 : i32, i32
  }
}

</mosaic_0001>

<bundles_post_ra>
// kernel: tpu_custom_call.1
= control target key start
LH: loop header
LB: loop body
LE: loop exit
PB: predicated region body
PF: predicated region fallthrough
CT: control target
= control target key end

     0   :  { %11 = vsyncpa [#allocation8], 0  ;;  %s679_s0 = inlined_call_operand.hbm [shape: f32[8,128], index: 0, kind: input, shape index: {}]   ;;  %s680_s1 = inlined_call_operand.hbm [shape: f32[8,128], index: 1, kind: input, shape index: {}]   ;;  %s681_s2 = inlined_call_operand.hbm [shape: f32[8,128], index: 2, kind: input, shape index: {}]   ;;  %s682_s3 = inlined_call_operand.hbm [shape: f32[8,128], index: 3, kind: input, shape index: {}]   ;;  %s683_s4 = inlined_call_operand.hbm [shape: f32[8,128], index: 4, kind: output, shape index: {0}]   ;;  %s684_s5 = inlined_call_operand.hbm [shape: f32[8,128], index: 5, kind: output, shape index: {1}]  }
   0x1   :  { %12 = vsyncpa [#allocation11], 0 }
   0x2   :  { %13 = vsyncpa [#allocation14], 0 }
   0x3   :  { %14 = vsyncpa [#allocation9], 0  ;;  %s32_s20 = sshll.u32 %s680_s1, 4  ;;  %s33_s20 = int_to_ptr.hbm [resolvable:$true] %s32_s20 }
   0x4   :  { %15 = vsyncpa [#allocation17], 0  ;;  %s587_s21 = smov [#allocation10]   ;;  %s21_s25 = sshll.u32 %s679_s0, 4  ;;  %s22_s25 = int_to_ptr.hbm [resolvable:$true] %s21_s25 }
   0x5   :  { %s34_s22 = sshll.u32 %s587_s21, 4  ;;  %s588_s26 = smov [#allocation7]   ;;  %s35_s22 = int_to_ptr.vmem [resolvable:$true] %s34_s22 }
   0x6   :  { %37 = dma.hbm_to_vmem [thread:$0]  %s33_s20, 128, %s35_s22, [#allocation11]  }
   0x7   :  { %s23_s27 = sshll.u32 %s588_s26, 4  ;;  %s43_s30 = sshll.u32 %s681_s2, 4  ;;  %s24_s27 = int_to_ptr.vmem [resolvable:$true] %s23_s27  ;;  %s44_s30 = int_to_ptr.hbm [resolvable:$true] %s43_s30 }
   0x8   :  { %26 = dma.hbm_to_vmem [thread:$0]  %s22_s25, 128, %s24_s27, [#allocation8]  }
   0x9   :  { %s54_s7 = sshll.u32 %s682_s3, 4  ;;  %s589_s8 = smov [#allocation12]   ;;  %s55_s7 = int_to_ptr.hbm [resolvable:$true] %s54_s7 }
   0xa   :  { %s45_s9 = sshll.u32 %s589_s8, 4  ;;  %s590_s0 = smov [#allocation13]   ;;  %s46_s9 = int_to_ptr.vmem [resolvable:$true] %s45_s9 }
   0xb   :  { %48 = dma.hbm_to_vmem [thread:$0]  %s44_s30, 128, %s46_s9, [#allocation11]  }
   0xc   :  { %s56_s10 = sshll.u32 %s590_s0, 4  ;;  %s57_s10 = int_to_ptr.vmem [resolvable:$true] %s56_s10 }
   0xd   :  { %59 = dma.hbm_to_vmem [thread:$0]  %s55_s7, 128, %s57_s10, [#allocation14]  }
   0xe   :  { %577 = dma.done.wait [#allocation8], 128  }
   0xf   :  { %578 = vsyncadd [#allocation8], 4294967168 }
  0x10   :  { %579 = dma.done.wait [#allocation11], 256  }
  0x11   :  { %580 = vsyncadd [#allocation11], 4294967040 }
  0x12   :  { %581 = dma.done.wait [#allocation14], 128  }
  0x13   :  { %582 = vsyncadd [#allocation14], 4294967168  ;;  %v637_v0 = vld [vmem:[#allocation12] sm:$0xff]  ;;  %v639_v1 = vld [vmem:[#allocation10] sm:$0xff]  ;;  %s593_s2 = smov [#allocation16]   ;;  %s373_s13 = sshll.u32 %s684_s5, 4  ;;  %s374_s13 = int_to_ptr.hbm [resolvable:$true] %s373_s13 }
  0x14   :  { %v159_v2 = vmul.f32 %v637_v0, %v637_v0  ;;  %v115_v3 = vmul.f32 %v639_v1, %v639_v1  ;;  %v645_v4 = vld [vmem:[#allocation13] sm:$0xff]  ;;  %v647_v5 = vld [vmem:[#allocation7] sm:$0xff]  ;;  %s371_s3 = sshll.u32 %s593_s2, 4  ;;  %s594_s14 = smov [#allocation15]   ;;  %s372_s3 = int_to_ptr.vmem [resolvable:$true] %s371_s3 }
  0x15   :  { %v193_v6 = vmul.f32 %v645_v4, %v645_v4  ;;  %v82_v7 = vmul.f32 %v647_v5, %v647_v5  ;;  %s360_s15 = sshll.u32 %s594_s14, 4  ;;  %s362_s18 = sshll.u32 %s683_s4, 4  ;;  %s361_s15 = int_to_ptr.vmem [resolvable:$true] %s360_s15  ;;  %s363_s18 = int_to_ptr.hbm [resolvable:$true] %s362_s18 }
  0x16   :  { %160 = vadd.xlane.f32.xlu1 %v159_v2  ;;  %116 = vadd.xlane.f32.xlu0 %v115_v3 }
  0x1e   :  { %194 = vadd.xlane.f32.xlu0 %v193_v6  ;;  %83 = vadd.xlane.f32.xlu1 %v82_v7 }
  0x89   :  { %v161_v8 = vpop.xlane.xlu1 %160  ;;  %v117_v9 = vpop.xlane.xlu0 %116 }
  0x8a   :  { %405 = vrsqrt.f32 %v161_v8  ;;  %vm169_vm0 = vcmp.eq.f32.partialorder %v161_v8, inf  ;;  %vm171_vm1 = vcmp.eq.f32.partialorder %v161_v8, 0.0  ;;  %v172_v30 = vand.u32 2147483648, %v161_v8 }
  0x8b   :  { %407 = vrsqrt.f32 %v117_v9  ;;  %vm125_vm2 = vcmp.eq.f32.partialorder %v117_v9, inf  ;;  %v128_v34 = vand.u32 2147483648, %v117_v9  ;;  %vm127_vm3 = vcmp.eq.f32.partialorder %v117_v9, 0.0 }
  0x90   :  { %v406_v10 = vpop.eup %405 }
  0x91   :  { %v408_v11 = vpop.eup %407  ;;  %v163_v12 = vmul.f32 %v406_v10, %v161_v8  ;;  %v195_v13 = vpop.xlane.xlu0 %194 }
  0x92   :  { %v84_v14 = vpop.xlane.xlu1 %83  ;;  %v119_v15 = vmul.f32 %v408_v11, %v117_v9  ;;  %409 = vrsqrt.f32 %v195_v13  ;;  %vm203_vm4 = vcmp.eq.f32.partialorder %v195_v13, inf  ;;  %v206_v47 = vand.u32 2147483648, %v195_v13 }
  0x93   :  { %v164_v16 = vmul.f32 %v406_v10, %v163_v12  ;;  %411 = vrsqrt.f32 %v84_v14  ;;  %vm205_vm5 = vcmp.eq.f32.partialorder %v195_v13, 0.0  ;;  %vm92_vm6 = vcmp.eq.f32.partialorder %v84_v14, inf }
  0x94   :  { %v120_v17 = vmul.f32 %v408_v11, %v119_v15  ;;  %v95_v51 = vand.u32 2147483648, %v84_v14  ;;  %vm94_vm7 = vcmp.eq.f32.partialorder %v84_v14, 0.0 }
  0x95   :  { %v165_v18 = vmul.f32 0.5, %v164_v16 }
  0x96   :  { %v121_v19 = vmul.f32 0.5, %v120_v17 }
  0x97   :  { %v166_v20 = vsub.f32 1.5, %v165_v18 }
  0x98   :  { %v410_v21 = vpop.eup %409  ;;  %v122_v22 = vsub.f32 1.5, %v121_v19 }
  0x99   :  { %v412_v23 = vpop.eup %411  ;;  %v167_v24 = vmul.f32 %v406_v10, %v166_v20  ;;  %v197_v25 = vmul.f32 %v410_v21, %v195_v13 }
  0x9a   :  { %v123_v26 = vmul.f32 %v408_v11, %v122_v22  ;;  %v86_v27 = vmul.f32 %v412_v23, %v84_v14 }
  0x9b   :  { %v168_v28 = vmul.f32 %v167_v24, %v161_v8  ;;  %v198_v29 = vmul.f32 %v410_v21, %v197_v25 }
  0x9c   :  { %v124_v31 = vmul.f32 %v123_v26, %v117_v9  ;;  %v87_v32 = vmul.f32 %v412_v23, %v86_v27 }
  0x9d   :  { %v170_v33 = vsel %vm169_vm0, %v161_v8, %v168_v28  ;;  %v199_v35 = vmul.f32 0.5, %v198_v29 }
  0x9e   :  { %v173_v36 = vsel %vm171_vm1, %v172_v30, %v170_v33  ;;  %v126_v37 = vsel %vm125_vm2, %v117_v9, %v124_v31  ;;  %v88_v38 = vmul.f32 0.5, %v87_v32 }
  0x9f   :  { %v174_v39 = vmax.f32 %v173_v36, 1e-12  ;;  %v129_v40 = vsel %vm127_vm3, %v128_v34, %v126_v37  ;;  %v200_v41 = vsub.f32 1.5, %v199_v35 }
  0xa0   :  { %v130_v42 = vmax.f32 %v129_v40, 1e-12  ;;  %v89_v43 = vsub.f32 1.5, %v88_v38 }
  0xa1   :  { %413 = vrcp.f32 %v174_v39  ;;  %v201_v44 = vmul.f32 %v410_v21, %v200_v41  ;;  %v186_v62 = vand.u32 2147483648, %v174_v39  ;;  %v184_v3 = vand.u32 2147483647, %v174_v39 }
  0xa2   :  { %415 = vrcp.f32 %v130_v42  ;;  %v90_v46 = vmul.f32 %v412_v23, %v89_v43  ;;  %v142_v63 = vand.u32 2147483648, %v130_v42  ;;  %v140_v7 = vand.u32 2147483647, %v130_v42 }
  0xa3   :  { %v202_v45 = vmul.f32 %v201_v44, %v195_v13  ;;  %vm180_vm10 = vweird.f32 %v174_v39  ;;  %vm136_vm11 = vweird.f32 %v130_v42  ;;  %v187_v11 = vor.u32 1.1754944e-38, %v186_v62 }
  0xa4   :  { %v91_v49 = vmul.f32 %v90_v46, %v84_v14  ;;  %v143_v12 = vor.u32 1.1754944e-38, %v142_v63  ;;  %vm185_vm14 = vcmp.eq.f32.partialorder %v184_v3, 8.507059e+37  ;;  %vm141_vm15 = vcmp.eq.f32.partialorder %v140_v7, 8.507059e+37 }
  0xa5   :  { %v204_v48 = vsel %vm203_vm4, %v195_v13, %v202_v45 }
  0xa6   :  { %v207_v50 = vsel %vm205_vm5, %v206_v47, %v204_v48  ;;  %v93_v54 = vsel %vm92_vm6, %v84_v14, %v91_v49  ;;  %v296_v47 = vlaneseq }
  0xa7   :  { %v414_v52 = vpop.eup %413  ;;  %v653_v53 = vmax.f32 %v207_v50, 1e-12  ;;  %v96_v56 = vsel %vm94_vm7, %v95_v51, %v93_v54 }
  0xa8   :  { %v416_v55 = vpop.eup %415  ;;  %v176_v57 = vmul.f32 %v414_v52, %v174_v39  ;;  %v97_v59 = vmax.f32 %v96_v56, 1e-12  ;;  %vm181_vm8 = vweird.f32 %v414_v52  ;;  %v299_v54 = vand.u32 127, %v296_v47 }
  0xa9   :  { %v132_v58 = vmul.f32 %v416_v55, %v130_v42  ;;  %417 = vrcp.f32 %v653_v53  ;;  %vm137_vm9 = vweird.f32 %v416_v55  ;;  %vm182_vm12 = vmor %vm180_vm10, %vm181_vm8  ;;  %v218_v25 = vand.u32 2147483647, %v653_v53 }
  0xaa   :  { %v177_v60 = vsub.f32 1.0, %v176_v57  ;;  %419 = vrcp.f32 %v97_v59  ;;  %vm138_vm13 = vmor %vm136_vm11, %vm137_vm9  ;;  %v220_v26 = vand.u32 2147483648, %v653_v53  ;;  %v109_v27 = vand.u32 2147483648, %v97_v59 }
  0xab   :  { %v133_v61 = vsub.f32 1.0, %v132_v58  ;;  %v107_v31 = vand.u32 2147483647, %v97_v59  ;;  %vm214_vm2 = vweird.f32 %v653_v53  ;;  %vm103_vm3 = vweird.f32 %v97_v59 }
  0xac   :  { %v178_v2 = vmul.f32 %v414_v52, %v177_v60  ;;  %v110_v33 = vor.u32 1.1754944e-38, %v109_v27  ;;  %vm219_vm6 = vcmp.eq.f32.partialorder %v218_v25, 8.507059e+37  ;;  %vm306_vm8 = vcmask 64512  }
  0xad   :  { %v134_v6 = vmul.f32 %v416_v55, %v133_v61  ;;  %vm108_vm7 = vcmp.eq.f32.partialorder %v107_v31, 8.507059e+37  ;;  %vm150_vm10 = vcmask 7168  }
  0xae   :  { %v179_v8 = vadd.f32 %v414_v52, %v178_v2 }
  0xaf   :  { %v418_v9 = vpop.eup %417  ;;  %v135_v10 = vadd.f32 %v416_v55, %v134_v6 }
  0xb0   :  { %v183_v13 = vsel %vm182_vm12, %v414_v52, %v179_v8  ;;  %v210_v14 = vmul.f32 %v418_v9, %v653_v53  ;;  %v420_v15 = vpop.eup %419  ;;  %vm215_vm0 = vweird.f32 %v418_v9  ;;  %v297_v53 = vshrl.u32 %v296_v47, 7 }
  0xb1   :  { %v139_v16 = vsel %vm138_vm13, %v416_v55, %v135_v10  ;;  %v188_v17 = vsel %vm185_vm14, %v187_v11, %v183_v13  ;;  %v99_v19 = vmul.f32 %v420_v15, %v97_v59  ;;  %vm104_vm1 = vweird.f32 %v420_v15  ;;  %vm216_vm4 = vmor %vm214_vm2, %vm215_vm0 }
  0xb2   :  { %v144_v18 = vsel %vm141_vm15, %v143_v12, %v139_v16  ;;  %v190_v20 = vmul.f32 %v188_v17, %v637_v0  ;;  %v211_v22 = vsub.f32 1.0, %v210_v14  ;;  %vm105_vm5 = vmor %vm103_vm3, %vm104_vm1  ;;  %v300_v60 = vsub.s32 %v297_v53, %v299_v54 }
  0xb3   :  { %v146_v21 = vmul.f32 %v144_v18, %v639_v1  ;;  %v100_v23 = vsub.f32 1.0, %v99_v19  ;;  %v221_v1 = vor.u32 1.1754944e-38, %v220_v26  ;;  %v591_v17 = vmov 0.0  }
  0xb4   :  { %v191_v24 = vpack.c.bf16 %v190_v20, %v190_v20  ;;  %v212_v28 = vmul.f32 %v418_v9, %v211_v22  ;;  %vm304_vm9 = vcmp.ne.s32.totalorder %v300_v60, 0  ;;  %157 = vst.msk [vmem:[#allocation6] sm:$0xff] %vm150_vm10, %v591_v17  ;;  %v592_v18 = vmov 0  }
  0xb5   :  { %v154_v29 = vpack.c.bf16 %v146_v21, %v146_v21  ;;  %v101_v30 = vmul.f32 %v420_v15, %v100_v23  ;;  %156 = vst.msk [vmem:[#allocation5] sm:$0xff] %vm150_vm10, %v591_v17  ;;  %404 = vset.pattern.permute.xlu1 %v592_v18  ;;  %403 = vset.pattern.permute.xlu0 %v592_v18 }
  0xb6   :  { %235 = vmatpush.bf16.xpose.msra.mxu0 %v191_v24  ;;  %261 = vmatpush.bf16.xpose.msra.mxu2 %v191_v24  ;;  %v213_v32 = vadd.f32 %v418_v9, %v212_v28 }
  0xb7   :  { %155 = vst [vmem:[#allocation3] sm:$0xf] %v154_v29  ;;  %v102_v0 = vadd.f32 %v420_v15, %v101_v30 }
  0xb8   :  { %v217_v34 = vsel %vm216_vm4, %v418_v9, %v213_v32 }
  0xb9   :  { %v106_v35 = vsel %vm105_vm5, %v420_v15, %v102_v0  ;;  %v222_v36 = vsel %vm219_vm6, %v221_v1, %v217_v34 }
  0xba   :  { %v111_v37 = vsel %vm108_vm7, %v110_v33, %v106_v35  ;;  %v224_v38 = vmul.f32 %v222_v36, %v645_v4 }
  0xbb   :  { %v113_v39 = vmul.f32 %v111_v37, %v647_v5 }
  0xbc   :  { %v225_v40 = vpack.c.bf16 %v224_v38, %v224_v38  ;;  %v322_v25 = vld [vmem:[#allocation5] sm:$0xff] }
  0xbd   :  { %v152_v42 = vpack.c.bf16 %v113_v39, %v113_v39  ;;  %v147_v43 = vmul.f32 %v146_v21, %v113_v39  ;;  %v326_v21 = vld [vmem:[#allocation6] sm:$0xff] }
  0xbe   :  { %v227_v41 = vld [vmem:[#allocation3] sm:$0xf]  ;;  %248 = vmatpush.bf16.xpose.msra.mxu1 %v225_v40  ;;  %274 = vmatpush.bf16.xpose.msra.mxu3 %v225_v40 }
  0xbf   :  { %262 = vmatmul.bf16.vlgmr.msra.gmra.mxu2 %v227_v41  ;;  %153 = vst [vmem:[#allocation2] sm:$0xf] %v152_v42 }
  0xc5   :  { %275 = vmatmul.bf16.vlgmr.msra.gmra.mxu3 %v227_v41 }
  0xc6   :  { %v226_v44 = vld [vmem:[#allocation2] sm:$0xf] }
  0xc7   :  { %236 = vmatmul.bf16.vlgmr.msra.gmra.mxu0 %v226_v44  ;;  %249 = vmatmul.bf16.vlgmr.msra.gmra.mxu1 %v226_v44 }
 0x142   :  { %v263_v45 = vpop.f32.mrf.mxu2 }
 0x143   :  { %v392_v46 = vadd.f32 -1.0, %v263_v45 }
 0x144   :  { %v237_v49 = vpop.f32.mrf.mxu0  ;;  %v250_v4 = vpop.f32.mrf.mxu1 }
 0x145   :  { %v289_v48 = vmul.f32 10.0, %v392_v46  ;;  %v390_v50 = vadd.f32 -1.0, %v237_v49  ;;  %v391_v51 = vadd.f32 -1.0, %v250_v4 }
 0x147   :  { %v290_v5 = vmul.f32 1.442695, %v289_v48  ;;  %v281_v52 = vmul.f32 10.0, %v390_v50  ;;  %v285_v58 = vmul.f32 10.0, %v391_v51 }
 0x148   :  { %v276_v56 = vpop.f32.mrf.mxu3 }
 0x149   :  { %421 = vpow2.f32 %v290_v5  ;;  %v282_v55 = vmul.f32 1.442695, %v281_v52  ;;  %v393_v59 = vadd.f32 -1.0, %v276_v56  ;;  %v286_v3 = vmul.f32 1.442695, %v285_v58 }
 0x14a   :  { %v265_v57 = vpop.f32.mrf.mxu2 }
 0x14b   :  { %423 = vpow2.f32 %v282_v55  ;;  %v293_v61 = vmul.f32 10.0, %v393_v59 }
 0x14c   :  { %v239_v62 = vpop.f32.mrf.mxu0  ;;  %v252_v63 = vpop.f32.mrf.mxu1 }
 0x14d   :  { %v294_v6 = vmul.f32 1.442695, %v293_v61 }
 0x14f   :  { %v422_v2 = vpop.eup %421  ;;  %425 = vpow2.f32 %v294_v6 }
 0x150   :  { %v314_v7 = vsel %vm306_vm8, %v422_v2, 0.0  ;;  %v278_v9 = vpop.f32.mrf.mxu3  ;;  %427 = vpow2.f32 %v286_v3 }
 0x151   :  { %315 = vadd.xlane.f32.xlu0 %v314_v7  ;;  %v424_v8 = vpop.eup %423 }
 0x152   :  { %v305_v10 = vsel %vm304_vm9, %v424_v8, 0.0 }
 0x153   :  { %v307_v11 = vsel %vm306_vm8, %v305_v10, 0.0 }
 0x154   :  { %308 = vadd.xlane.f32.xlu2 %v307_v11 }
 0x155   :  { %v426_v12 = vpop.eup %425 }
 0x156   :  { %v317_v13 = vsel %vm304_vm9, %v426_v12, 0.0  ;;  %v428_v14 = vpop.eup %427 }
 0x157   :  { %v318_v15 = vsel %vm306_vm8, %v317_v13, 0.0  ;;  %v310_v16 = vsel %vm306_vm8, %v428_v14, 0.0 }
 0x158   :  { %319 = vadd.xlane.f32.xlu1 %v318_v15 }
 0x15c   :  { %311 = vadd.xlane.f32.xlu2 %v310_v16 }
 0x164   :  { %148 = vadd.xlane.f32.xlu2 %v147_v43 }
 0x1c4   :  { %v316_v20 = vpop.xlane.xlu0 %315 }
 0x1c7   :  { %v309_v19 = vpop.xlane.xlu2 %308 }
 0x1cb   :  { %v320_v22 = vpop.xlane.xlu1 %319 }
 0x1cc   :  { %v321_v23 = vadd.f32 %v320_v22, %v316_v20 }
 0x1ce   :  { %v327_v24 = vadd.f32 %v326_v21, %v321_v23 }
 0x1cf   :  { %v312_v26 = vpop.xlane.xlu2 %311 }
 0x1d0   :  { %v313_v27 = vadd.f32 %v312_v26, %v309_v19  ;;  %328 = vst.msk [vmem:[#allocation6] sm:$0xff] %vm150_vm10, %v327_v24 }
 0x1d2   :  { %v323_v28 = vadd.f32 %v322_v25, %v313_v27 }
 0x1d4   :  { %325 = vst.msk [vmem:[#allocation5] sm:$0xff] %vm150_vm10, %v323_v28 }
 0x1d7   :  { %v149_v29 = vpop.xlane.xlu2 %148  ;;  %v339_v30 = vld [vmem:[#allocation6] sm:$0xff] }
 0x1d8   :  { %151 = vst.msk [vmem:[#allocation4] sm:$0xff] %vm150_vm10, %v149_v29  ;;  %429 = vlog2.f32 %v339_v30 }
 0x1db   :  { %v335_v31 = vld [vmem:[#allocation5] sm:$0xff] }
 0x1dc   :  { %431 = vlog2.f32 %v335_v31 }
 0x1de   :  { %v430_v32 = vpop.eup %429 }
 0x1df   :  { %v332_v0 = vld [vmem:[#allocation4] sm:$0xff]  ;;  %v341_v35 = vmul.f32 0.6931472, %v430_v32 }
 0x1e0   :  { %v394_v1 = vadd.f32 -1.0, %v332_v0 }
 0x1e2   :  { %v432_v33 = vpop.eup %431  ;;  %v334_v34 = vmul.f32 10.0, %v394_v1 }
 0x1e3   :  { %v337_v36 = vmul.f32 0.6931472, %v432_v33 }
 0x1e4   :  { %v342_v37 = vsub.f32 %v341_v35, %v334_v34 }
 0x1e5   :  { %v338_v38 = vsub.f32 %v337_v36, %v334_v34 }
 0x1e6   :  { %351 = vperm.xlu1 %404, %v342_v37  }
 0x1e7   :  { %345 = vperm.xlu0 %403, %v338_v38  }
 0x258   :  { %v352_v39 = vpop.permute.xlu1 %351 }
 0x259   :  { %354 = vst [vmem:[#allocation16] sm:$0xff] %v352_v39  ;;  %v346_v40 = vpop.permute.xlu0 %345 }
 0x25a   :  { %348 = vst [vmem:[#allocation15] sm:$0xff] %v346_v40  ;;  %376 = dma.vmem_to_hbm [thread:$0]  %s372_s3, 128, %s374_s13, [#allocation17]  }
 0x25b   :  { %365 = dma.vmem_to_hbm [thread:$0]  %s361_s15, 128, %s363_s18, [#allocation9]  }
 0x25c   :  { %583 = dma.done.wait [#allocation9], 128  }
 0x25d   :  { %584 = vsyncadd [#allocation9], 4294967168 }
 0x25e   :  { %585 = dma.done.wait [#allocation17], 128  }
 0x25f   :  { %586 = vsyncadd [#allocation17], 4294967168 }
 0x260   :  { %385 = vsyncpa [#allocation8], 1 }
 0x261   :  { %386 = vsyncpa [#allocation11], 1 }
 0x262   :  { %387 = vsyncpa [#allocation14], 1 }
 0x263   :  { %388 = vsyncpa [#allocation9], 1 }
 0x264   :  { %389 = vsyncpa [#allocation17], 1 }

</bundles_post_ra>
